<compile_context>
chip_gen: v7x
topology: tpu7x:2x2x1
jax: 0.10.0
libtpu: 0.0.40
codegen_flags: <defaults>
</compile_context>

<pallas_src>
import jax
import jax.numpy as jnp
from jax.experimental import pallas as pl
from jax.experimental.pallas import tpu as pltpu

D_IN, D_H1, D_H2, D_OUT = 768, 256, 128, 4
D_OUT_PAD = 128  # lane-pad the tiny 4-wide output to a full 128-lane block


def _round_up(n, m):
    return ((n + m - 1) // m) * m


def mlp_kernel(x_ref, w1_ref, b1_ref, w2_ref, b2_ref, w3_ref, b3_ref, o_ref):
    # Cast operands to bf16 in-register (native MXU input dtype); accumulate in f32.
    x = x_ref[...].astype(jnp.bfloat16)

    # Layer 1: Linear(768 -> 256) + ReLU.
    h1 = jnp.dot(x, w1_ref[...].astype(jnp.bfloat16),
                 preferred_element_type=jnp.float32)
    h1 = jnp.maximum(h1 + b1_ref[...], 0.0)

    # Dropout(0.3): identity in eval mode.
    # TODO(synk): add stochastic dropout via pltpu.prng_random_bits if training-mode
    # semantics are ever required.

    # Layer 2: Linear(256 -> 128) + ReLU.
    h2 = jnp.dot(h1.astype(jnp.bfloat16), w2_ref[...].astype(jnp.bfloat16),
                 preferred_element_type=jnp.float32)
    h2 = jnp.maximum(h2 + b2_ref[...], 0.0)

    # Layer 3: Linear(128 -> 4), lane-padded to 128 output columns (unmasked store).
    out = jnp.dot(h2.astype(jnp.bfloat16), w3_ref[...].astype(jnp.bfloat16),
                  preferred_element_type=jnp.float32) + b3_ref[...]
    o_ref[...] = out.astype(o_ref.dtype)


def pronunciation_regressor(x, params, *, tile_b=None):
    """x: [B, 768] float32 -> [B, 4] float32."""
    w1, b1, w2, b2, w3, b3 = params
    B = x.shape[0]

    # Large batch tiles (up to 1024 rows) to feed the MXU and amortize per-step
    # pipeline overhead; keep multiples of 8 sublanes.
    if tile_b is None:
        tile_b = min(1024, _round_up(B, 8))
    tile_b = max(8, _round_up(tile_b, 8))
    B_pad = _round_up(B, tile_b)

    # Only the batch axis needs wrapper-side padding (zero rows are harmless row-wise).
    x_in = x if B_pad == B else jnp.pad(x, ((0, B_pad - B), (0, 0)))

    # Zero-pad the last layer to 128 output lanes so the final matmul / store are
    # full-width.  These pads are tiny (<= 64 KiB) one-off ops.
    w3_pad = jnp.zeros((D_H2, D_OUT_PAD), jnp.float32).at[:, :D_OUT].set(w3)
    b3_pad = jnp.zeros((1, D_OUT_PAD), jnp.float32).at[:, :D_OUT].set(b3)

    grid = (B_pad // tile_b,)

    # Weights/biases are small (~1 MiB f32 total) -> each is a single full block whose
    # index_map is constant over the grid, so it is DMA'd once and stays resident in
    # VMEM; only the batch axis of x / out is tiled over the grid.
    # TODO(synk): for a serving path with many calls, pre-cast the weights to bf16 once
    # outside the kernel instead of per-step in-kernel casts.
    full = lambda shape: pl.BlockSpec(shape, lambda i: (0, 0))

    out_padded = pl.pallas_call(
        mlp_kernel,
        out_shape=jax.ShapeDtypeStruct((B_pad, D_OUT_PAD), jnp.float32),
        grid_spec=pltpu.PrefetchScalarGridSpec(
            num_scalar_prefetch=0,
            grid=grid,
            in_specs=[
                pl.BlockSpec((tile_b, D_IN), lambda i: (i, 0)),  # x tile (f32)
                full((D_IN, D_H1)),                              # w1 (f32)
                full((1, D_H1)),                                 # b1 (f32)
                full((D_H1, D_H2)),                              # w2 (f32)
                full((1, D_H2)),                                 # b2 (f32)
                full((D_H2, D_OUT_PAD)),                         # w3 padded (f32)
                full((1, D_OUT_PAD)),                            # b3 padded (f32)
            ],
            out_specs=pl.BlockSpec((tile_b, D_OUT_PAD), lambda i: (i, 0)),
        ),
        compiler_params=pltpu.CompilerParams(
            dimension_semantics=("parallel",),
            vmem_limit_bytes=32 * 1024 * 1024,
        ),
    )(x_in, w1, b1, w2, b2, w3_pad, b3_pad)

    return out_padded[:B, :D_OUT]


def init_params(key):
    """Deterministic parameter init matching nn.Linear shapes (stored transposed)."""
    ks = jax.random.split(key, 6)

    def linear(kw, kb, fan_in, fan_out):
        bound = 1.0 / jnp.sqrt(fan_in)
        w = jax.random.uniform(kw, (fan_in, fan_out), jnp.float32, -bound, bound)
        b = jax.random.uniform(kb, (1, fan_out), jnp.float32, -bound, bound)
        return w, b

    w1, b1 = linear(ks[0], ks[1], D_IN, D_H1)
    w2, b2 = linear(ks[2], ks[3], D_H1, D_H2)
    w3, b3 = linear(ks[4], ks[5], D_H2, D_OUT)
    return (w1, b1, w2, b2, w3, b3)


def reference_forward(x, params):
    w1, b1, w2, b2, w3, b3 = params
    h1 = jnp.maximum(x @ w1 + b1, 0.0)
    h2 = jnp.maximum(h1 @ w2 + b2, 0.0)
    return h2 @ w3 + b3


if __name__ == "__main__":
    key = jax.random.PRNGKey(0)
    k_x, k_p = jax.random.split(key)

    # Small, deliberately non-multiple-of-8 batch to exercise the wrapper-side padding.
    B = 50
    x = jax.random.normal(k_x, (B, D_IN), dtype=jnp.float32)
    params = init_params(k_p)

    out = pronunciation_regressor(x, params)
    out = jax.block_until_ready(out)

    ref = reference_forward(x, params)
    assert out.shape == (B, D_OUT)
    # bf16 matmul inputs with f32 accumulation -> compare against f32 reference with
    # a tolerance comfortably above bf16 input-rounding noise.
    assert jnp.allclose(out, ref, atol=5e-2, rtol=5e-2)

    print("KERNEL_OK")
</pallas_src>

<mosaic_0001>
module attributes {stable_mosaic.version = 11 : i64} {
  func.func @mlp_kernel(%arg0: i32, %arg1: memref<56x768xf32, #tpu.memory_space<vmem>>, %arg2: memref<768x256xf32, #tpu.memory_space<vmem>>, %arg3: memref<1x256xf32, #tpu.memory_space<vmem>>, %arg4: memref<256x128xf32, #tpu.memory_space<vmem>>, %arg5: memref<1x128xf32, #tpu.memory_space<vmem>>, %arg6: memref<128x128xf32, #tpu.memory_space<vmem>>, %arg7: memref<1x128xf32, #tpu.memory_space<vmem>>, %arg8: memref<56x128xf32, #tpu.memory_space<vmem>>) attributes {dimension_semantics = [#tpu.dimension_semantics<parallel>], iteration_bounds = array<i64: 1>, scalar_prefetch = 0 : i64, scratch_operands = 0 : i64, tpu.core_type = #tpu.core_type<tc>, window_params = [{transform_indices = @transform_0, window_bounds = array<i64: 56, 768>}, {pipeline_mode = #tpu.pipeline_mode<synchronous>, transform_indices = @transform_1, window_bounds = array<i64: 768, 256>}, {pipeline_mode = #tpu.pipeline_mode<synchronous>, transform_indices = @transform_2, window_bounds = array<i64: 1, 256>}, {pipeline_mode = #tpu.pipeline_mode<synchronous>, transform_indices = @transform_3, window_bounds = array<i64: 256, 128>}, {pipeline_mode = #tpu.pipeline_mode<synchronous>, transform_indices = @transform_4, window_bounds = array<i64: 1, 128>}, {pipeline_mode = #tpu.pipeline_mode<synchronous>, transform_indices = @transform_5, window_bounds = array<i64: 128, 128>}, {pipeline_mode = #tpu.pipeline_mode<synchronous>, transform_indices = @transform_6, window_bounds = array<i64: 1, 128>}, {transform_indices = @transform_7, window_bounds = array<i64: 56, 128>}]} {
    %c0 = arith.constant 0 : index
    %c0_0 = arith.constant 0 : index
    %0 = vector.load %arg1[%c0, %c0_0] : memref<56x768xf32, #tpu.memory_space<vmem>>, vector<56x768xf32>
    %1 = arith.truncf %0 : vector<56x768xf32> to vector<56x768xbf16>
    %c0_1 = arith.constant 0 : index
    %c0_2 = arith.constant 0 : index
    %2 = vector.load %arg2[%c0_1, %c0_2] : memref<768x256xf32, #tpu.memory_space<vmem>>, vector<768x256xf32>
    %3 = arith.truncf %2 : vector<768x256xf32> to vector<768x256xbf16>
    %cst = arith.constant dense<0.000000e+00> : vector<56x256xf32>
    %4 = tpu.matmul %1, %3, %cst {dimension_numbers = #tpu.dot_dimension_numbers<[1], [0], [0], [1], [0, 0, 1, 1], [], []>} : vector<56x768xbf16>, vector<768x256xbf16>, vector<56x256xf32> -> vector<56x256xf32>
    %c0_3 = arith.constant 0 : index
    %c0_4 = arith.constant 0 : index
    %5 = vector.load %arg3[%c0_3, %c0_4] : memref<1x256xf32, #tpu.memory_space<vmem>>, vector<1x256xf32>
    %6 = vector.broadcast %5 : vector<1x256xf32> to vector<56x256xf32>
    %7 = arith.addf %4, %6 : vector<56x256xf32>
    %cst_5 = arith.constant 0.000000e+00 : f32
    %8 = vector.broadcast %cst_5 : f32 to vector<56x256xf32>
    %9 = arith.maximumf %7, %8 : vector<56x256xf32>
    %10 = arith.truncf %9 : vector<56x256xf32> to vector<56x256xbf16>
    %c0_6 = arith.constant 0 : index
    %c0_7 = arith.constant 0 : index
    %11 = vector.load %arg4[%c0_6, %c0_7] : memref<256x128xf32, #tpu.memory_space<vmem>>, vector<256x128xf32>
    %12 = arith.truncf %11 : vector<256x128xf32> to vector<256x128xbf16>
    %cst_8 = arith.constant dense<0.000000e+00> : vector<56x128xf32>
    %13 = tpu.matmul %10, %12, %cst_8 {dimension_numbers = #tpu.dot_dimension_numbers<[1], [0], [0], [1], [0, 0, 1, 1], [], []>} : vector<56x256xbf16>, vector<256x128xbf16>, vector<56x128xf32> -> vector<56x128xf32>
    %c0_9 = arith.constant 0 : index
    %c0_10 = arith.constant 0 : index
    %14 = vector.load %arg5[%c0_9, %c0_10] : memref<1x128xf32, #tpu.memory_space<vmem>>, vector<1x128xf32>
    %15 = vector.broadcast %14 : vector<1x128xf32> to vector<56x128xf32>
    %16 = arith.addf %13, %15 : vector<56x128xf32>
    %cst_11 = arith.constant 0.000000e+00 : f32
    %17 = vector.broadcast %cst_11 : f32 to vector<56x128xf32>
    %18 = arith.maximumf %16, %17 : vector<56x128xf32>
    %19 = arith.truncf %18 : vector<56x128xf32> to vector<56x128xbf16>
    %c0_12 = arith.constant 0 : index
    %c0_13 = arith.constant 0 : index
    %20 = vector.load %arg6[%c0_12, %c0_13] : memref<128x128xf32, #tpu.memory_space<vmem>>, vector<128x128xf32>
    %21 = arith.truncf %20 : vector<128x128xf32> to vector<128x128xbf16>
    %cst_14 = arith.constant dense<0.000000e+00> : vector<56x128xf32>
    %22 = tpu.matmul %19, %21, %cst_14 {dimension_numbers = #tpu.dot_dimension_numbers<[1], [0], [0], [1], [0, 0, 1, 1], [], []>} : vector<56x128xbf16>, vector<128x128xbf16>, vector<56x128xf32> -> vector<56x128xf32>
    %c0_15 = arith.constant 0 : index
    %c0_16 = arith.constant 0 : index
    %23 = vector.load %arg7[%c0_15, %c0_16] : memref<1x128xf32, #tpu.memory_space<vmem>>, vector<1x128xf32>
    %24 = vector.broadcast %23 : vector<1x128xf32> to vector<56x128xf32>
    %25 = arith.addf %22, %24 : vector<56x128xf32>
    %c0_17 = arith.constant 0 : index
    %c0_18 = arith.constant 0 : index
    %26 = vector.load %arg8[%c0_17, %c0_18] : memref<56x128xf32, #tpu.memory_space<vmem>>, vector<56x128xf32>
    tpu.vector_store %arg8[%c0_17, %c0_18], %25 {strides = array<i32>} : memref<56x128xf32, #tpu.memory_space<vmem>>, vector<56x128xf32>,
    return
  }
  func.func @transform_0(%arg0: i32) -> (i32, i32) {
    %c0_i32 = arith.constant 0 : i32
    %c0_i32_0 = arith.constant 0 : i32
    return %arg0, %c0_i32 : i32, i32
  }
  func.func @transform_1(%arg0: i32) -> (i32, i32) {
    %c0_i32 = arith.constant 0 : i32
    %c0_i32_0 = arith.constant 0 : i32
    %c0_i32_1 = arith.constant 0 : i32
    return %c0_i32, %c0_i32_0 : i32, i32
  }
  func.func @transform_2(%arg0: i32) -> (i32, i32) {
    %c0_i32 = arith.constant 0 : i32
    %c0_i32_0 = arith.constant 0 : i32
    %c0_i32_1 = arith.constant 0 : i32
    return %c0_i32, %c0_i32_0 : i32, i32
  }
  func.func @transform_3(%arg0: i32) -> (i32, i32) {
    %c0_i32 = arith.constant 0 : i32
    %c0_i32_0 = arith.constant 0 : i32
    %c0_i32_1 = arith.constant 0 : i32
    return %c0_i32, %c0_i32_0 : i32, i32
  }
  func.func @transform_4(%arg0: i32) -> (i32, i32) {
    %c0_i32 = arith.constant 0 : i32
    %c0_i32_0 = arith.constant 0 : i32
    %c0_i32_1 = arith.constant 0 : i32
    return %c0_i32, %c0_i32_0 : i32, i32
  }
  func.func @transform_5(%arg0: i32) -> (i32, i32) {
    %c0_i32 = arith.constant 0 : i32
    %c0_i32_0 = arith.constant 0 : i32
    %c0_i32_1 = arith.constant 0 : i32
    return %c0_i32, %c0_i32_0 : i32, i32
  }
  func.func @transform_6(%arg0: i32) -> (i32, i32) {
    %c0_i32 = arith.constant 0 : i32
    %c0_i32_0 = arith.constant 0 : i32
    %c0_i32_1 = arith.constant 0 : i32
    return %c0_i32, %c0_i32_0 : i32, i32
  }
  func.func @transform_7(%arg0: i32) -> (i32, i32) {
    %c0_i32 = arith.constant 0 : i32
    %c0_i32_0 = arith.constant 0 : i32
    return %arg0, %c0_i32 : i32, i32
  }
}

</mosaic_0001>

<bundles_post_ra>
// kernel: tpu_custom_call.1
= control target key start
LH: loop header
LB: loop body
LE: loop exit
PB: predicated region body
PF: predicated region fallthrough
CT: control target
= control target key end

     0   :  { %12 = vsyncpa [#allocation3], 0  ;;  %s1345_s0 = inlined_call_operand.hbm [shape: f32[56,768], index: 0, kind: input, shape index: {}]   ;;  %s1346_s1 = inlined_call_operand.hbm [shape: f32[768,256], index: 1, kind: input, shape index: {}]   ;;  %s1347_s2 = inlined_call_operand.vmem [shape: f32[1,256], index: 2, kind: input, shape index: {}]   ;;  %s1348_s3 = inlined_call_operand.hbm [shape: f32[256,128], index: 3, kind: input, shape index: {}]   ;;  %s1349_s4 = inlined_call_operand.vmem [shape: f32[1,128], index: 4, kind: input, shape index: {}]   ;;  %s1350_s5 = inlined_call_operand.hbm [shape: f32[128,128], index: 5, kind: input, shape index: {}]   ;;  %s1351_s6 = inlined_call_operand.vmem [shape: f32[1,128], index: 6, kind: input, shape index: {}]   ;;  %s1352_s7 = inlined_call_operand.hbm [shape: f32[56,128], index: 7, kind: output, shape index: {}]  }
   0x1   :  { %13 = vsyncpa [#allocation6], 0 }
   0x2   :  { %14 = vsyncpa [#allocation9], 0 }
   0x3   :  { %15 = vsyncpa [#allocation4], 0  ;;  %s1186_s24 = smov [#allocation5]   ;;  %s1068_s28 = scalar_lea.hbm %s1346_s1, 24576 }
   0x4   :  { %s33_s25 = sshll.u32 %s1186_s24, 4  ;;  %p1069_p0 = scmp.ne.s32.totalorder %s1346_s1, %s1068_s28  ;;  %s34_s25 = int_to_ptr.vmem [resolvable:$true] %s33_s25 }
   0x5   :  { %p1072_p1 = scmp.lt.u32.totalorder %s1068_s28, %s1346_s1 }
   0x7   :  { %p1074_p2 = pnand %p1072_p1, %p1069_p0 }
   0x9   :  { %1077 = shalt.err (!%p1074_p2)
}
   0xa   :  { %s1078_s10 = scalar_lea.vmem %s34_s25, 24576  ;;  %p1083_p4 = scmp.lt.s32.totalorder %s34_s25, %s34_s25 }
   0xb   :  { %p1079_p3 = scmp.ne.s32.totalorder %s34_s25, %s1078_s10  ;;  %p1084_p5 = scmp.lt.s32.totalorder %s1078_s10, %s1078_s10 }
   0xd   :  { %p1085_p6 = por %p1084_p5, %p1083_p4 }
   0xf   :  { %p1086_p7 = pnand %p1085_p6, %p1079_p3 }
  0x11   :  { %1089 = shalt.err (!%p1086_p7)
}
  0x12   :  { %s1187_s11 = smov 256   ;;  %s1188_s12 = smov 16  }
  0x13   :  { %39 = dma.hbm_to_vmem [thread:$0]  %s1346_s1, 24576, %s34_s25, [#allocation6], %s1187_s11, %s1187_s11, %s1188_s12  }
  0x14   :  { %s1189_s15 = smov [#allocation2]   ;;  %s1090_s19 = scalar_lea.hbm %s1345_s0, 5376 }
  0x15   :  { %s21_s16 = sshll.u32 %s1189_s15, 4  ;;  %p1091_p8 = scmp.ne.s32.totalorder %s1345_s0, %s1090_s19  ;;  %s22_s16 = int_to_ptr.vmem [resolvable:$true] %s21_s16 }
  0x16   :  { %p1094_p9 = scmp.lt.u32.totalorder %s1090_s19, %s1345_s0 }
  0x18   :  { %p1096_p10 = pnand %p1094_p9, %p1091_p8 }
  0x1a   :  { %1099 = shalt.err (!%p1096_p10)
}
  0x1b   :  { %s1100_s24 = scalar_lea.vmem %s22_s16, 5376  ;;  %p1105_p12 = scmp.lt.s32.totalorder %s22_s16, %s22_s16 }
  0x1c   :  { %p1101_p11 = scmp.ne.s32.totalorder %s22_s16, %s1100_s24  ;;  %p1106_p13 = scmp.lt.s32.totalorder %s1100_s24, %s1100_s24 }
  0x1e   :  { %p1107_p0 = por %p1106_p13, %p1105_p12 }
  0x20   :  { %p1108_p1 = pnand %p1107_p0, %p1101_p11 }
  0x22   :  { %1111 = shalt.err (!%p1108_p1)
}
  0x23   :  { %s1190_s1 = smov 768   ;;  %s1191_s25 = smov 48  }
  0x24   :  { %27 = dma.hbm_to_vmem [thread:$0]  %s1345_s0, 5376, %s22_s16, [#allocation3], %s1190_s1, %s1190_s1, %s1191_s25  }
  0x25   :  { %s1192_s28 = smov [#allocation7]   ;;  %s1112_s9 = scalar_lea.hbm %s1348_s3, 4096 }
  0x26   :  { %s47_s29 = sshll.u32 %s1192_s28, 4  ;;  %p1113_p2 = scmp.ne.s32.totalorder %s1348_s3, %s1112_s9  ;;  %s48_s29 = int_to_ptr.vmem [resolvable:$true] %s47_s29 }
  0x27   :  { %p1116_p3 = scmp.lt.u32.totalorder %s1112_s9, %s1348_s3 }
  0x29   :  { %p1118_p4 = pnand %p1116_p3, %p1113_p2 }
  0x2b   :  { %1121 = shalt.err (!%p1118_p4)
}
  0x2c   :  { %s1122_s14 = scalar_lea.vmem %s48_s29, 4096  ;;  %p1127_p6 = scmp.lt.s32.totalorder %s48_s29, %s48_s29 }
  0x2d   :  { %p1123_p5 = scmp.ne.s32.totalorder %s48_s29, %s1122_s14  ;;  %p1128_p7 = scmp.lt.s32.totalorder %s1122_s14, %s1122_s14 }
  0x2f   :  { %p1129_p8 = por %p1128_p7, %p1127_p6 }
  0x31   :  { %p1130_p9 = pnand %p1129_p8, %p1123_p5 }
  0x33   :  { %1133 = shalt.err (!%p1130_p9)
}
  0x34   :  { %s1193_s0 = smov 128   ;;  %s1194_s15 = smov 8  }
  0x35   :  { %53 = dma.hbm_to_vmem [thread:$0]  %s1348_s3, 4096, %s48_s29, [#allocation6], %s1193_s0, %s1193_s0, %s1194_s15  }
  0x36   :  { %s1195_s18 = smov [#allocation8]   ;;  %s1134_s22 = scalar_lea.hbm %s1350_s5, 2048 }
  0x37   :  { %s61_s19 = sshll.u32 %s1195_s18, 4  ;;  %p1135_p10 = scmp.ne.s32.totalorder %s1350_s5, %s1134_s22  ;;  %s62_s19 = int_to_ptr.vmem [resolvable:$true] %s61_s19 }
  0x38   :  { %p1138_p11 = scmp.lt.u32.totalorder %s1134_s22, %s1350_s5 }
  0x3a   :  { %p1140_p12 = pnand %p1138_p11, %p1135_p10 }
  0x3c   :  { %1143 = shalt.err (!%p1140_p12)
}
  0x3d   :  { %s1144_s26 = scalar_lea.vmem %s62_s19, 2048  ;;  %p1149_p0 = scmp.lt.s32.totalorder %s62_s19, %s62_s19 }
  0x3e   :  { %p1145_p13 = scmp.ne.s32.totalorder %s62_s19, %s1144_s26  ;;  %p1150_p1 = scmp.lt.s32.totalorder %s1144_s26, %s1144_s26 }
  0x40   :  { %p1151_p2 = por %p1150_p1, %p1149_p0 }
  0x42   :  { %p1152_p3 = pnand %p1151_p2, %p1145_p13 }
  0x44   :  { %1155 = shalt.err (!%p1152_p3)
}
  0x45   :  { %67 = dma.hbm_to_vmem [thread:$0]  %s1350_s5, 2048, %s62_s19, [#allocation9], %s1193_s0, %s1193_s0, %s1194_s15  }
  0x46   :  { %1178 = dma.done.wait [#allocation3], 5376  }
  0x47   :  { %1179 = vsyncadd [#allocation3], 4294961920 }
  0x48   :  { %1180 = dma.done.wait [#allocation6], 28672  }
  0x49   :  { %1181 = vsyncadd [#allocation6], 4294938624 }
  0x4a   :  { %1182 = dma.done.wait [#allocation9], 2048  }
  0x4b   :  { %1183 = vsyncadd [#allocation9], 4294965248  ;;  %v214_v0 = vld [vmem:[#allocation5 + $0x208] sm:$0xff]  ;;  %v216_v1 = vld [vmem:[#allocation5 + $0x218] sm:$0xff]  ;;  %s1196_s8 = smov [#allocation10]  }
  0x4c   :  { %v213_v2 = vld [vmem:[#allocation5 + $0x200] sm:$0xff]  ;;  %v374_v3 = vpack.c.bf16 %v216_v1, %v214_v0  ;;  %v215_v4 = vld [vmem:[#allocation5 + $0x210] sm:$0xff]  ;;  %v218_v5 = vld [vmem:[#allocation5 + $0x228] sm:$0xff]  ;;  %s921_s9 = sshll.u32 %s1196_s8, 4  ;;  %s922_s9 = int_to_ptr.vmem [resolvable:$true] %s921_s9 }
  0x4d   :  { %v220_v6 = vld [vmem:[#allocation5 + $0x238] sm:$0xff]  ;;  %v373_v7 = vpack.c.bf16 %v215_v4, %v213_v2  ;;  %v217_v9 = vld [vmem:[#allocation5 + $0x220] sm:$0xff]  ;;  %v219_v10 = vld [vmem:[#allocation5 + $0x230] sm:$0xff]  ;;  %p1161_p5 = scmp.lt.s32.totalorder %s922_s9, %s922_s9 }
  0x4e   :  { %v376_v8 = vpack.c.bf16 %v220_v6, %v218_v5  ;;  %v222_v11 = vld [vmem:[#allocation5 + $0x248] sm:$0xff]  ;;  %520 = vmatprep.subr.bf16.mxu0 %v374_v3  ;;  %v224_v12 = vld [vmem:[#allocation5 + $0x258] sm:$0xff]  ;;  %v375_v13 = vpack.c.bf16 %v219_v10, %v217_v9  ;;  %v221_v15 = vld [vmem:[#allocation5 + $0x240] sm:$0xff] }
  0x4f   :  { %521 = vmatpush1.bf16.msra.mxu0 %v373_v7  ;;  %v378_v14 = vpack.c.bf16 %v224_v12, %v222_v11  ;;  %v223_v16 = vld [vmem:[#allocation5 + $0x250] sm:$0xff]  ;;  %v226_v17 = vld [vmem:[#allocation5 + $0x268] sm:$0xff]  ;;  %v228_v18 = vld [vmem:[#allocation5 + $0x278] sm:$0xff] }
  0x50   :  { %522 = vmatprep.subr.bf16.mxu0 %v376_v8  ;;  %v377_v19 = vpack.c.bf16 %v223_v16, %v221_v15  ;;  %v380_v20 = vpack.c.bf16 %v228_v18, %v226_v17  ;;  %v225_v21 = vld [vmem:[#allocation5 + $0x260] sm:$0xff]  ;;  %v227_v22 = vld [vmem:[#allocation5 + $0x270] sm:$0xff]  ;;  %v230_v23 = vld [vmem:[#allocation5 + $0x288] sm:$0xff] }
  0x51   :  { %v232_v24 = vld [vmem:[#allocation5 + $0x298] sm:$0xff]  ;;  %v379_v25 = vpack.c.bf16 %v227_v22, %v225_v21  ;;  %v229_v27 = vld [vmem:[#allocation5 + $0x280] sm:$0xff]  ;;  %v231_v28 = vld [vmem:[#allocation5 + $0x290] sm:$0xff] }
  0x52   :  { %v382_v26 = vpack.c.bf16 %v232_v24, %v230_v23  ;;  %v234_v29 = vld [vmem:[#allocation5 + $0x2a8] sm:$0xff]  ;;  %v236_v30 = vld [vmem:[#allocation5 + $0x2b8] sm:$0xff]  ;;  %v381_v31 = vpack.c.bf16 %v231_v28, %v229_v27  ;;  %v233_v33 = vld [vmem:[#allocation5 + $0x2a0] sm:$0xff] }
  0x53   :  { %523 = vmatpush1.bf16.msra.mxu0 %v375_v13  ;;  %v384_v32 = vpack.c.bf16 %v236_v30, %v234_v29  ;;  %v235_v34 = vld [vmem:[#allocation5 + $0x2b0] sm:$0xff]  ;;  %v238_v35 = vld [vmem:[#allocation5 + $0x2c8] sm:$0xff]  ;;  %v240_v36 = vld [vmem:[#allocation5 + $0x2d8] sm:$0xff] }
  0x54   :  { %524 = vmatprep.subr.bf16.mxu0 %v378_v14  ;;  %v383_v37 = vpack.c.bf16 %v235_v34, %v233_v33  ;;  %v150_v38 = vld [vmem:[#allocation5 + $0x8] sm:$0xff]  ;;  %v152_v39 = vld [vmem:[#allocation5 + $0x18] sm:$0xff]  ;;  %v149_v40 = vld [vmem:[#allocation5] sm:$0xff]  ;;  %v386_v41 = vpack.c.bf16 %v240_v36, %v238_v35 }
  0x55   :  { %v237_v42 = vld [vmem:[#allocation5 + $0x2c0] sm:$0xff]  ;;  %v239_v43 = vld [vmem:[#allocation5 + $0x2d0] sm:$0xff]  ;;  %v342_v44 = vpack.c.bf16 %v152_v39, %v150_v38  ;;  %v242_v46 = vld [vmem:[#allocation5 + $0x2e8] sm:$0xff] }
  0x56   :  { %v151_v45 = vld [vmem:[#allocation5 + $0x10] sm:$0xff]  ;;  %v244_v47 = vld [vmem:[#allocation5 + $0x2f8] sm:$0xff]  ;;  %v154_v49 = vld [vmem:[#allocation5 + $0x28] sm:$0xff]  ;;  %v385_v53 = vpack.c.bf16 %v239_v43, %v237_v42 }
  0x57   :  { %525 = vmatpush1.bf16.msra.mxu0 %v377_v19  ;;  %v341_v48 = vpack.c.bf16 %v151_v45, %v149_v40  ;;  %449 = vmatprep.subr.bf16.mxu1 %v342_v44  ;;  %v156_v50 = vld [vmem:[#allocation5 + $0x38] sm:$0xff]  ;;  %v153_v51 = vld [vmem:[#allocation5 + $0x20] sm:$0xff]  ;;  %v155_v52 = vld [vmem:[#allocation5 + $0x30] sm:$0xff]  ;;  %v388_v58 = vpack.c.bf16 %v244_v47, %v242_v46 }
  0x58   :  { %526 = vmatprep.subr.bf16.mxu0 %v380_v20  ;;  %v344_v54 = vpack.c.bf16 %v156_v50, %v154_v49  ;;  %v343_v55 = vpack.c.bf16 %v155_v52, %v153_v51  ;;  %v86_v56 = vld [vmem:[#allocation2 + $0x18] sm:$0xff]  ;;  %v92_v57 = vld [vmem:[#allocation2 + $0x48] sm:$0xff]  ;;  %v241_v59 = vld [vmem:[#allocation5 + $0x2e0] sm:$0xff] }
  0x59   :  { %450 = vmatpush1.bf16.msra.mxu1 %v341_v48  ;;  %v243_v60 = vld [vmem:[#allocation5 + $0x2f0] sm:$0xff]  ;;  %v128_v61 = vpack.c.bf16 %v92_v57, %v86_v56  ;;  %v246_v62 = vld [vmem:[#allocation5 + $0x308] sm:$0xff]  ;;  %v248_v63 = vld [vmem:[#allocation5 + $0x318] sm:$0xff] }
  0x5a   :  { %451 = vmatprep.subr.bf16.mxu1 %v344_v54  ;;  %v158_v0 = vld [vmem:[#allocation5 + $0x48] sm:$0xff]  ;;  %v160_v1 = vld [vmem:[#allocation5 + $0x58] sm:$0xff]  ;;  %v157_v2 = vld [vmem:[#allocation5 + $0x40] sm:$0xff]  ;;  %v387_v4 = vpack.c.bf16 %v243_v60, %v241_v59  ;;  %v390_v9 = vpack.c.bf16 %v248_v63, %v246_v62 }
  0x5b   :  { %527 = vmatpush1.bf16.msra.mxu0 %v379_v25  ;;  %552 = vmatprep.mubr.bf16.mxu0 %v128_v61  ;;  %v159_v3 = vld [vmem:[#allocation5 + $0x50] sm:$0xff]  ;;  %v245_v5 = vld [vmem:[#allocation5 + $0x300] sm:$0xff]  ;;  %v346_v7 = vpack.c.bf16 %v160_v1, %v158_v0  ;;  %v250_v10 = vld [vmem:[#allocation5 + $0x328] sm:$0xff] }
  0x5c   :  { %528 = vmatprep.subr.bf16.mxu0 %v382_v26  ;;  %v247_v6 = vld [vmem:[#allocation5 + $0x310] sm:$0xff]  ;;  %v345_v8 = vpack.c.bf16 %v159_v3, %v157_v2  ;;  %v162_v11 = vld [vmem:[#allocation5 + $0x68] sm:$0xff]  ;;  %v164_v12 = vld [vmem:[#allocation5 + $0x78] sm:$0xff] }
  0x5d   :  { %452 = vmatpush1.bf16.msra.mxu1 %v343_v55  ;;  %v252_v13 = vld [vmem:[#allocation5 + $0x338] sm:$0xff]  ;;  %v348_v14 = vpack.c.bf16 %v164_v12, %v162_v11  ;;  %v161_v15 = vld [vmem:[#allocation5 + $0x60] sm:$0xff]  ;;  %v163_v16 = vld [vmem:[#allocation5 + $0x70] sm:$0xff]  ;;  %v389_v17 = vpack.c.bf16 %v247_v6, %v245_v5 }
  0x5e   :  { %453 = vmatprep.subr.bf16.mxu1 %v346_v7  ;;  %v249_v18 = vld [vmem:[#allocation5 + $0x320] sm:$0xff]  ;;  %v347_v19 = vpack.c.bf16 %v163_v16, %v161_v15  ;;  %v166_v20 = vld [vmem:[#allocation5 + $0x88] sm:$0xff]  ;;  %v168_v21 = vld [vmem:[#allocation5 + $0x98] sm:$0xff]  ;;  %v392_v22 = vpack.c.bf16 %v252_v13, %v250_v10 }
  0x5f   :  { %529 = vmatpush1.bf16.msra.mxu0 %v381_v31  ;;  %v251_v23 = vld [vmem:[#allocation5 + $0x330] sm:$0xff]  ;;  %v350_v24 = vpack.c.bf16 %v168_v21, %v166_v20  ;;  %v165_v25 = vld [vmem:[#allocation5 + $0x80] sm:$0xff]  ;;  %v254_v27 = vld [vmem:[#allocation5 + $0x348] sm:$0xff] }
  0x60   :  { %530 = vmatprep.subr.bf16.mxu0 %v384_v32  ;;  %v167_v26 = vld [vmem:[#allocation5 + $0x90] sm:$0xff]  ;;  %v256_v28 = vld [vmem:[#allocation5 + $0x358] sm:$0xff]  ;;  %v170_v29 = vld [vmem:[#allocation5 + $0xa8] sm:$0xff]  ;;  %v391_v31 = vpack.c.bf16 %v251_v23, %v249_v18 }
  0x61   :  { %454 = vmatpush1.bf16.msra.mxu1 %v345_v8  ;;  %v172_v30 = vld [vmem:[#allocation5 + $0xb8] sm:$0xff]  ;;  %v253_v32 = vld [vmem:[#allocation5 + $0x340] sm:$0xff]  ;;  %v255_v33 = vld [vmem:[#allocation5 + $0x350] sm:$0xff]  ;;  %v349_v34 = vpack.c.bf16 %v167_v26, %v165_v25  ;;  %v394_v35 = vpack.c.bf16 %v256_v28, %v254_v27 }
  0x62   :  { %455 = vmatprep.subr.bf16.mxu1 %v348_v14  ;;  %v258_v36 = vld [vmem:[#allocation5 + $0x368] sm:$0xff]  ;;  %v169_v38 = vld [vmem:[#allocation5 + $0xa0] sm:$0xff]  ;;  %v171_v39 = vld [vmem:[#allocation5 + $0xb0] sm:$0xff]  ;;  %v393_v43 = vpack.c.bf16 %v255_v33, %v253_v32 }
  0x63   :  { %531 = vmatpush1.bf16.msra.mxu0 %v383_v37  ;;  %v352_v37 = vpack.c.bf16 %v172_v30, %v170_v29  ;;  %v260_v40 = vld [vmem:[#allocation5 + $0x378] sm:$0xff]  ;;  %v257_v44 = vld [vmem:[#allocation5 + $0x360] sm:$0xff]  ;;  %v259_v45 = vld [vmem:[#allocation5 + $0x370] sm:$0xff]  ;;  %v351_v46 = vpack.c.bf16 %v171_v39, %v169_v38 }
  0x64   :  { %532 = vmatprep.subr.bf16.mxu0 %v386_v41  ;;  %v174_v41 = vld [vmem:[#allocation5 + $0xc8] sm:$0xff]  ;;  %v176_v42 = vld [vmem:[#allocation5 + $0xd8] sm:$0xff]  ;;  %v396_v47 = vpack.c.bf16 %v260_v40, %v258_v36  ;;  %v173_v50 = vld [vmem:[#allocation5 + $0xc0] sm:$0xff]  ;;  %v395_v55 = vpack.c.bf16 %v259_v45, %v257_v44 }
  0x65   :  { %456 = vmatpush1.bf16.msra.mxu1 %v347_v19  ;;  %v262_v48 = vld [vmem:[#allocation5 + $0x388] sm:$0xff]  ;;  %v354_v49 = vpack.c.bf16 %v176_v42, %v174_v41  ;;  %v175_v51 = vld [vmem:[#allocation5 + $0xd0] sm:$0xff]  ;;  %v264_v52 = vld [vmem:[#allocation5 + $0x398] sm:$0xff] }
  0x66   :  { %457 = vmatprep.subr.bf16.mxu1 %v350_v24  ;;  %v180_v54 = vld [vmem:[#allocation5 + $0xf8] sm:$0xff]  ;;  %v261_v56 = vld [vmem:[#allocation5 + $0x380] sm:$0xff]  ;;  %v263_v57 = vld [vmem:[#allocation5 + $0x390] sm:$0xff]  ;;  %v398_v59 = vpack.c.bf16 %v264_v52, %v262_v48 }
  0x67   :  { %533 = vmatpush1.bf16.msra.mxu0 %v385_v53  ;;  %v178_v53 = vld [vmem:[#allocation5 + $0xe8] sm:$0xff]  ;;  %v177_v62 = vld [vmem:[#allocation5 + $0xe0] sm:$0xff]  ;;  %v179_v63 = vld [vmem:[#allocation5 + $0xf0] sm:$0xff]  ;;  %v397_v3 = vpack.c.bf16 %v263_v57, %v261_v56 }
  0x68   :  { %534 = vmatprep.subr.bf16.mxu0 %v388_v58  ;;  %v353_v58 = vpack.c.bf16 %v175_v51, %v173_v50  ;;  %v266_v60 = vld [vmem:[#allocation5 + $0x3a8] sm:$0xff]  ;;  %v356_v61 = vpack.c.bf16 %v180_v54, %v178_v53  ;;  %v268_v0 = vld [vmem:[#allocation5 + $0x3b8] sm:$0xff]  ;;  %v267_v5 = vld [vmem:[#allocation5 + $0x3b0] sm:$0xff]  ;;  %v355_v6 = vpack.c.bf16 %v179_v63, %v177_v62 }
  0x69   :  { %458 = vmatpush1.bf16.msra.mxu1 %v349_v34  ;;  %v182_v1 = vld [vmem:[#allocation5 + $0x108] sm:$0xff]  ;;  %v184_v2 = vld [vmem:[#allocation5 + $0x118] sm:$0xff]  ;;  %v400_v7 = vpack.c.bf16 %v268_v0, %v266_v60  ;;  %v181_v10 = vld [vmem:[#allocation5 + $0x100] sm:$0xff] }
  0x6a   :  { %459 = vmatprep.subr.bf16.mxu1 %v352_v37  ;;  %v270_v8 = vld [vmem:[#allocation5 + $0x3c8] sm:$0xff]  ;;  %v183_v11 = vld [vmem:[#allocation5 + $0x110] sm:$0xff]  ;;  %v272_v12 = vld [vmem:[#allocation5 + $0x3d8] sm:$0xff] }
  0x6b   :  { %535 = vmatpush1.bf16.msra.mxu0 %v387_v4  ;;  %v265_v4 = vld [vmem:[#allocation5 + $0x3a0] sm:$0xff]  ;;  %v186_v13 = vld [vmem:[#allocation5 + $0x128] sm:$0xff]  ;;  %v188_v14 = vld [vmem:[#allocation5 + $0x138] sm:$0xff]  ;;  %v357_v18 = vpack.c.bf16 %v183_v11, %v181_v10  ;;  %v402_v19 = vpack.c.bf16 %v272_v12, %v270_v8 }
  0x6c   :  { %536 = vmatprep.subr.bf16.mxu0 %v390_v9  ;;  %v358_v9 = vpack.c.bf16 %v184_v2, %v182_v1  ;;  %v399_v15 = vpack.c.bf16 %v267_v5, %v265_v4  ;;  %v269_v16 = vld [vmem:[#allocation5 + $0x3c0] sm:$0xff]  ;;  %v274_v20 = vld [vmem:[#allocation5 + $0x3e8] sm:$0xff]  ;;  %v360_v21 = vpack.c.bf16 %v188_v14, %v186_v13  ;;  %v187_v23 = vld [vmem:[#allocation5 + $0x130] sm:$0xff] }
  0x6d   :  { %460 = vmatpush1.bf16.msra.mxu1 %v351_v46  ;;  %v276_v24 = vld [vmem:[#allocation5 + $0x3f8] sm:$0xff]  ;;  %v190_v25 = vld [vmem:[#allocation5 + $0x148] sm:$0xff]  ;;  %v273_v28 = vld [vmem:[#allocation5 + $0x3e0] sm:$0xff] }
  0x6e   :  { %461 = vmatprep.subr.bf16.mxu1 %v354_v49  ;;  %v192_v26 = vld [vmem:[#allocation5 + $0x158] sm:$0xff]  ;;  %v275_v29 = vld [vmem:[#allocation5 + $0x3f0] sm:$0xff]  ;;  %v278_v32 = vld [vmem:[#allocation5 + $0x408] sm:$0xff] }
  0x6f   :  { %537 = vmatpush1.bf16.msra.mxu0 %v389_v17  ;;  %v271_v17 = vld [vmem:[#allocation5 + $0x3d0] sm:$0xff]  ;;  %v362_v33 = vpack.c.bf16 %v192_v26, %v190_v25  ;;  %v189_v34 = vld [vmem:[#allocation5 + $0x140] sm:$0xff]  ;;  %v280_v36 = vld [vmem:[#allocation5 + $0x418] sm:$0xff]  ;;  %v403_v40 = vpack.c.bf16 %v275_v29, %v273_v28 }
  0x70   :  { %538 = vmatprep.subr.bf16.mxu0 %v392_v22  ;;  %v185_v22 = vld [vmem:[#allocation5 + $0x120] sm:$0xff]  ;;  %v401_v27 = vpack.c.bf16 %v271_v17, %v269_v16  ;;  %v194_v37 = vld [vmem:[#allocation5 + $0x168] sm:$0xff]  ;;  %v196_v38 = vld [vmem:[#allocation5 + $0x178] sm:$0xff]  ;;  %v406_v45 = vpack.c.bf16 %v280_v36, %v278_v32 }
  0x71   :  { %462 = vmatpush1.bf16.msra.mxu1 %v353_v58  ;;  %v359_v30 = vpack.c.bf16 %v187_v23, %v185_v22  ;;  %v85_v39 = vld [vmem:[#allocation2 + $0x10] sm:$0xff]  ;;  %v91_v41 = vld [vmem:[#allocation2 + $0x40] sm:$0xff]  ;;  %v282_v46 = vld [vmem:[#allocation5 + $0x428] sm:$0xff] }
  0x72   :  { %463 = vmatprep.subr.bf16.mxu1 %v356_v61  ;;  %v277_v42 = vld [vmem:[#allocation5 + $0x400] sm:$0xff]  ;;  %v98_v48 = vld [vmem:[#allocation2 + $0x78] sm:$0xff]  ;;  %v104_v49 = vld [vmem:[#allocation2 + $0xa8] sm:$0xff]  ;;  %v127_v53 = vpack.c.bf16 %v91_v41, %v85_v39 }
  0x73   :  { %539 = vmatpush1.bf16.msra.mxu0 %v391_v31  ;;  %v404_v31 = vpack.c.bf16 %v276_v24, %v274_v20  ;;  %v284_v50 = vld [vmem:[#allocation5 + $0x438] sm:$0xff]  ;;  %v193_v51 = vld [vmem:[#allocation5 + $0x160] sm:$0xff]  ;;  %v195_v52 = vld [vmem:[#allocation5 + $0x170] sm:$0xff]  ;;  %v134_v58 = vpack.c.bf16 %v104_v49, %v98_v48 }
  0x74   :  { %540 = vmatprep.subr.bf16.mxu0 %v394_v35  ;;  %v191_v35 = vld [vmem:[#allocation5 + $0x150] sm:$0xff]  ;;  %v198_v54 = vld [vmem:[#allocation5 + $0x188] sm:$0xff]  ;;  %v281_v57 = vld [vmem:[#allocation5 + $0x420] sm:$0xff]  ;;  %v363_v63 = vpack.c.bf16 %v195_v52, %v193_v51 }
  0x75   :  { %464 = vmatpush1.bf16.msra.mxu1 %v355_v6  ;;  %v361_v44 = vpack.c.bf16 %v191_v35, %v189_v34  ;;  %v283_v60 = vld [vmem:[#allocation5 + $0x430] sm:$0xff]  ;;  %v286_v61 = vld [vmem:[#allocation5 + $0x448] sm:$0xff]  ;;  %v288_v62 = vld [vmem:[#allocation5 + $0x458] sm:$0xff] }
  0x76   :  { %465 = vmatprep.subr.bf16.mxu1 %v358_v9  ;;  %v197_v1 = vld [vmem:[#allocation5 + $0x180] sm:$0xff]  ;;  %v199_v2 = vld [vmem:[#allocation5 + $0x190] sm:$0xff]  ;;  %v204_v5 = vld [vmem:[#allocation5 + $0x1b8] sm:$0xff]  ;;  %v407_v8 = vpack.c.bf16 %v283_v60, %v281_v57  ;;  %v410_v13 = vpack.c.bf16 %v288_v62, %v286_v61 }
  0x77   :  { %541 = vmatpush1.bf16.msra.mxu0 %v393_v43  ;;  %v279_v43 = vld [vmem:[#allocation5 + $0x410] sm:$0xff]  ;;  %v285_v4 = vld [vmem:[#allocation5 + $0x440] sm:$0xff]  ;;  %v84_v6 = vld [vmem:[#allocation2 + $0x8] sm:$0xff] }
  0x78   :  { %542 = vmatprep.subr.bf16.mxu0 %v396_v47  ;;  %v364_v47 = vpack.c.bf16 %v196_v38, %v194_v37  ;;  %v405_v56 = vpack.c.bf16 %v279_v43, %v277_v42  ;;  %v287_v9 = vld [vmem:[#allocation5 + $0x450] sm:$0xff]  ;;  %v97_v10 = vld [vmem:[#allocation2 + $0x70] sm:$0xff]  ;;  %v290_v14 = vld [vmem:[#allocation5 + $0x468] sm:$0xff] }
  0x79   :  { %466 = vmatpush1.bf16.msra.mxu1 %v357_v18  ;;  %v103_v11 = vld [vmem:[#allocation2 + $0xa0] sm:$0xff]  ;;  %v110_v16 = vld [vmem:[#allocation2 + $0xd8] sm:$0xff]  ;;  %v116_v17 = vld [vmem:[#allocation2 + $0x108] sm:$0xff]  ;;  %v409_v25 = vpack.c.bf16 %v287_v9, %v285_v4 }
  0x7a   :  { %467 = vmatprep.subr.bf16.mxu1 %v360_v21  ;;  %v292_v18 = vld [vmem:[#allocation5 + $0x478] sm:$0xff]  ;;  %v201_v20 = vld [vmem:[#allocation5 + $0x1a0] sm:$0xff]  ;;  %v203_v21 = vld [vmem:[#allocation5 + $0x1b0] sm:$0xff]  ;;  %v133_v22 = vpack.c.bf16 %v103_v11, %v97_v10  ;;  %v140_v26 = vpack.c.bf16 %v116_v17, %v110_v16 }
  0x7b   :  { %543 = vmatpush1.bf16.msra.mxu0 %v395_v55  ;;  %v200_v55 = vld [vmem:[#allocation5 + $0x198] sm:$0xff]  ;;  %v206_v23 = vld [vmem:[#allocation5 + $0x1c8] sm:$0xff]  ;;  %v289_v28 = vld [vmem:[#allocation5 + $0x460] sm:$0xff] }
  0x7c   :  { %544 = vmatprep.subr.bf16.mxu0 %v398_v59  ;;  %v408_v59 = vpack.c.bf16 %v284_v50, %v282_v46  ;;  %v366_v0 = vpack.c.bf16 %v200_v55, %v198_v54  ;;  %v208_v24 = vld [vmem:[#allocation5 + $0x1d8] sm:$0xff]  ;;  %v291_v29 = vld [vmem:[#allocation5 + $0x470] sm:$0xff]  ;;  %v205_v34 = vld [vmem:[#allocation5 + $0x1c0] sm:$0xff] }
  0x7d   :  { %468 = vmatpush1.bf16.msra.mxu1 %v359_v30  ;;  %v294_v30 = vld [vmem:[#allocation5 + $0x488] sm:$0xff]  ;;  %v296_v32 = vld [vmem:[#allocation5 + $0x498] sm:$0xff]  ;;  %v207_v35 = vld [vmem:[#allocation5 + $0x1d0] sm:$0xff]  ;;  %v411_v38 = vpack.c.bf16 %v291_v29, %v289_v28 }
  0x7e   :  { %469 = vmatprep.subr.bf16.mxu1 %v362_v33  ;;  %v370_v33 = vpack.c.bf16 %v208_v24, %v206_v23  ;;  %v210_v36 = vld [vmem:[#allocation5 + $0x1e8] sm:$0xff]  ;;  %v212_v37 = vld [vmem:[#allocation5 + $0x1f8] sm:$0xff]  ;;  %v293_v39 = vld [vmem:[#allocation5 + $0x480] sm:$0xff]  ;;  %v414_v42 = vpack.c.bf16 %v296_v32, %v294_v30 }
  0x7f   :  { %545 = vmatpush1.bf16.msra.mxu0 %v397_v3  ;;  %v202_v3 = vld [vmem:[#allocation5 + $0x1a8] sm:$0xff]  ;;  %v115_v41 = vld [vmem:[#allocation2 + $0x100] sm:$0xff]  ;;  %v372_v48 = vpack.c.bf16 %v212_v37, %v210_v36  ;;  %v209_v49 = vld [vmem:[#allocation5 + $0x1e0] sm:$0xff] }
  0x80   :  { %546 = vmatprep.subr.bf16.mxu0 %v400_v7  ;;  %v90_v7 = vld [vmem:[#allocation2 + $0x38] sm:$0xff]  ;;  %v295_v43 = vld [vmem:[#allocation5 + $0x490] sm:$0xff]  ;;  %v700_v52 = vld [vmem:[#allocation7 + $0x80] sm:$0xff] }
  0x81   :  { %470 = vmatpush1.bf16.msra.mxu1 %v361_v44  ;;  %v126_v12 = vpack.c.bf16 %v90_v7, %v84_v6  ;;  %v298_v44 = vld [vmem:[#allocation5 + $0x4a8] sm:$0xff]  ;;  %v211_v50 = vld [vmem:[#allocation5 + $0x1f0] sm:$0xff]  ;;  %v413_v54 = vpack.c.bf16 %v295_v43, %v293_v39  ;;  %v297_v55 = vld [vmem:[#allocation5 + $0x4a0] sm:$0xff] }
  0x82   :  { %471 = vmatprep.subr.bf16.mxu1 %v364_v47  ;;  %v122_v46 = vld [vmem:[#allocation2 + $0x138] sm:$0xff]  ;;  %v300_v47 = vld [vmem:[#allocation5 + $0x4b8] sm:$0xff]  ;;  %v371_v60 = vpack.c.bf16 %v211_v50, %v209_v49  ;;  %v83_v61 = vld [vmem:[#allocation2] sm:$0xff] }
  0x83   :  { %547 = vmatpush1.bf16.msra.mxu0 %v399_v15  ;;  %v365_v15 = vpack.c.bf16 %v199_v2, %v197_v1  ;;  %481 = vmatprep.mubr.bf16.mxu1 %v126_v12  ;;  %v146_v57 = vpack.c.bf16 %v122_v46, %v122_v46  ;;  %v89_v62 = vld [vmem:[#allocation2 + $0x30] sm:$0xff]  ;;  %v102_v1 = vld [vmem:[#allocation2 + $0x98] sm:$0xff]  ;;  %v702_v9 = vld [vmem:[#allocation7 + $0x90] sm:$0xff] }
  0x84   :  { %548 = vmatprep.subr.bf16.mxu0 %v402_v19  ;;  %v368_v19 = vpack.c.bf16 %v204_v5, %v202_v3  ;;  %v301_v3 = vld [vmem:[#allocation5 + $0x4c0] sm:$0xff]  ;;  %v685_v5 = vld [vmem:[#allocation7 + $0x8] sm:$0xff]  ;;  %v703_v10 = vld [vmem:[#allocation7 + $0x98] sm:$0xff] }
  0x85   :  { %472 = vmatpush1.bf16.msra.mxu1 %v363_v63  ;;  %v304_v63 = vld [vmem:[#allocation5 + $0x4d8] sm:$0xff]  ;;  %v684_v4 = vld [vmem:[#allocation7] sm:$0xff]  ;;  %v303_v12 = vld [vmem:[#allocation5 + $0x4d0] sm:$0xff] }
  0x86   :  { %473 = vmatprep.subr.bf16.mxu1 %v366_v0  ;;  %v96_v0 = vld [vmem:[#allocation2 + $0x68] sm:$0xff]  ;;  %v121_v7 = vld [vmem:[#allocation2 + $0x130] sm:$0xff]  ;;  %v306_v16 = vld [vmem:[#allocation5 + $0x4e8] sm:$0xff]  ;;  %v417_v24 = vpack.c.bf16 %v303_v12, %v301_v3 }
  0x87   :  { %549 = vmatpush1.bf16.msra.mxu0 %v401_v27  ;;  %v412_v27 = vpack.c.bf16 %v292_v18, %v290_v14  ;;  %v94_v14 = vld [vmem:[#allocation2 + $0x58] sm:$0xff]  ;;  %v308_v17 = vld [vmem:[#allocation5 + $0x4f8] sm:$0xff]  ;;  %v716_v18 = vpack.c.bf16 %v685_v5, %v684_v4  ;;  %v101_v32 = vld [vmem:[#allocation2 + $0x90] sm:$0xff] }
  0x88   :  { %550 = vmatprep.subr.bf16.mxu0 %v404_v31  ;;  %v367_v31 = vpack.c.bf16 %v203_v21, %v201_v20  ;;  %v145_v20 = vpack.c.bf16 %v121_v7, %v121_v7  ;;  %v725_v21 = vpack.c.bf16 %v703_v10, %v702_v9  ;;  %v687_v23 = vld [vmem:[#allocation7 + $0x18] sm:$0xff]  ;;  %v705_v28 = vld [vmem:[#allocation7 + $0xa8] sm:$0xff]  ;;  %v420_v29 = vpack.c.bf16 %v308_v17, %v306_v16  ;;  %v311_v46 = vld [vmem:[#allocation5 + $0x510] sm:$0xff] }
  0x89   :  { %474 = vmatpush1.bf16.msra.mxu1 %v365_v15  ;;  %v132_v15 = vpack.c.bf16 %v102_v1, %v96_v0  ;;  %v310_v30 = vld [vmem:[#allocation5 + $0x508] sm:$0xff]  ;;  %v707_v43 = vld [vmem:[#allocation7 + $0xb8] sm:$0xff]  ;;  %v319_v7 = vld [vmem:[#allocation5 + $0x550] sm:$0xff] }
  0x8a   :  { %475 = vmatprep.subr.bf16.mxu1 %v368_v19  ;;  %v305_v19 = vld [vmem:[#allocation5 + $0x4e0] sm:$0xff]  ;;  %v689_v39 = vld [vmem:[#allocation7 + $0x28] sm:$0xff]  ;;  %v316_v49 = vld [vmem:[#allocation5 + $0x538] sm:$0xff] }
  0x8b   :  { %551 = vmatpush1.bf16.msra.mxu0 %v403_v40  ;;  %v109_v40 = vld [vmem:[#allocation2 + $0xd0] sm:$0xff]  ;;  %v120_v0 = vld [vmem:[#allocation2 + $0x128] sm:$0xff]  ;;  %v322_v9 = vld [vmem:[#allocation5 + $0x568] sm:$0xff] }
  0x8c   :  { %591 = vmatprep.subr.bf16.mxu0 %v406_v45  ;;  %v369_v45 = vpack.c.bf16 %v207_v35, %v205_v34  ;;  %v139_v51 = vpack.c.bf16 %v115_v41, %v109_v40  ;;  %v108_v34 = vld [vmem:[#allocation2 + $0xc8] sm:$0xff]  ;;  %v114_v35 = vld [vmem:[#allocation2 + $0xf8] sm:$0xff] }
  0x8d   :  { %476 = vmatpush1.bf16.msra.mxu1 %v367_v31  ;;  %v95_v31 = vld [vmem:[#allocation2 + $0x60] sm:$0xff]  ;;  %v324_v10 = vld [vmem:[#allocation5 + $0x578] sm:$0xff]  ;;  %v326_v16 = vld [vmem:[#allocation5 + $0x588] sm:$0xff] }
  0x8e   :  { %553 = vmatmul.mubr.bf16.vlgmr.msra.gmra.mrb[0].mxu0 %v127_v53  ;;  %477 = vmatprep.subr.bf16.mxu1 %v370_v33  ;;  %v701_v53 = vld [vmem:[#allocation7 + $0x88] sm:$0xff]  ;;  %v312_v33 = vld [vmem:[#allocation5 + $0x518] sm:$0xff]  ;;  %v131_v41 = vpack.c.bf16 %v101_v32, %v95_v31  ;;  %v428_v12 = vpack.c.bf16 %v324_v10, %v322_v9  ;;  %v696_v9 = vld [vmem:[#allocation7 + $0x60] sm:$0xff] }
  0x8f   :  { %592 = vmatpush1.bf16.msra.mxu0 %v405_v56  ;;  %562 = vmatprep.mubr.bf16.mxu0 %v134_v58  ;;  %v299_v56 = vld [vmem:[#allocation5 + $0x4b0] sm:$0xff]  ;;  %v416_v58 = vpack.c.bf16 %v300_v47, %v298_v44  ;;  %v724_v2 = vpack.c.bf16 %v701_v53, %v700_v52  ;;  %v422_v44 = vpack.c.bf16 %v312_v33, %v310_v30  ;;  %v691_v53 = vld [vmem:[#allocation7 + $0x38] sm:$0xff]  ;;  %v333_v33 = vld [vmem:[#allocation5 + $0x5c0] sm:$0xff] }
  0x90   :  { %593 = vmatprep.subr.bf16.mxu0 %v408_v59  ;;  %v302_v59 = vld [vmem:[#allocation5 + $0x4c8] sm:$0xff]  ;;  %v415_v6 = vpack.c.bf16 %v299_v56, %v297_v55  ;;  %v138_v47 = vpack.c.bf16 %v114_v35, %v108_v34  ;;  %v690_v52 = vld [vmem:[#allocation7 + $0x30] sm:$0xff]  ;;  %v313_v55 = vld [vmem:[#allocation5 + $0x520] sm:$0xff] }
  0x91   :  { %478 = vmatpush1.bf16.msra.mxu1 %v369_v45  ;;  %v418_v11 = vpack.c.bf16 %v304_v63, %v302_v59  ;;  %v309_v45 = vld [vmem:[#allocation5 + $0x500] sm:$0xff]  ;;  %v315_v59 = vld [vmem:[#allocation5 + $0x530] sm:$0xff]  ;;  %v320_v63 = vld [vmem:[#allocation5 + $0x558] sm:$0xff]  ;;  %v719_v1 = vpack.c.bf16 %v691_v53, %v690_v52 }
  0x92   :  { %479 = vmatprep.subr.bf16.mxu1 %v372_v48  ;;  %v314_v48 = vld [vmem:[#allocation5 + $0x528] sm:$0xff]  ;;  %v708_v56 = vld [vmem:[#allocation7 + $0xc0] sm:$0xff]  ;;  %v423_v3 = vpack.c.bf16 %v315_v59, %v313_v55  ;;  %v328_v17 = vld [vmem:[#allocation5 + $0x598] sm:$0xff] }
  0x93   :  { %594 = vmatpush1.bf16.msra.mxu0 %v407_v8  ;;  %v125_v8 = vpack.c.bf16 %v89_v62, %v83_v61  ;;  %v113_v61 = vld [vmem:[#allocation2 + $0xf0] sm:$0xff]  ;;  %v318_v62 = vld [vmem:[#allocation5 + $0x548] sm:$0xff]  ;;  %v336_v30 = vld [vmem:[#allocation5 + $0x5d8] sm:$0xff] }
  0x94   :  { %595 = vmatprep.subr.bf16.mxu0 %v410_v13  ;;  %v88_v13 = vld [vmem:[#allocation2 + $0x28] sm:$0xff]  ;;  %v426_v5 = vpack.c.bf16 %v320_v63, %v318_v62  ;;  %v335_v34 = vld [vmem:[#allocation5 + $0x5d0] sm:$0xff]  ;;  %v338_v35 = vld [vmem:[#allocation5 + $0x5e8] sm:$0xff] }
  0x95   :  { %480 = vmatpush1.bf16.msra.mxu1 %v371_v60  ;;  %v107_v60 = vld [vmem:[#allocation2 + $0xc0] sm:$0xff]  ;;  %v117_v55 = vld [vmem:[#allocation2 + $0x110] sm:$0xff]  ;;  %v693_v62 = vld [vmem:[#allocation7 + $0x48] sm:$0xff] }
  0x96   :  { %563 = vmatmul.mubr.bf16.gmra.mrb[4].mxu0 %v133_v22  ;;  %937 = vmatprep.subr.bf16.mxu1 %v724_v2  ;;  %v686_v22 = vld [vmem:[#allocation7 + $0x10] sm:$0xff]  ;;  %v137_v4 = vpack.c.bf16 %v113_v61, %v107_v60  ;;  %v692_v61 = vld [vmem:[#allocation7 + $0x40] sm:$0xff]  ;;  %v697_v10 = vld [vmem:[#allocation7 + $0x68] sm:$0xff] }
  0x97   :  { %596 = vmatpush1.bf16.msra.mxu0 %v409_v25  ;;  %572 = vmatprep.mubr.bf16.mxu0 %v140_v26  ;;  %v307_v25 = vld [vmem:[#allocation5 + $0x4f0] sm:$0xff]  ;;  %v130_v26 = vpack.c.bf16 %v94_v14, %v88_v13  ;;  %v717_v36 = vpack.c.bf16 %v687_v23, %v686_v22  ;;  %v321_v13 = vld [vmem:[#allocation5 + $0x560] sm:$0xff]  ;;  %v330_v23 = vld [vmem:[#allocation5 + $0x5a8] sm:$0xff]  ;;  %v720_v63 = vpack.c.bf16 %v693_v62, %v692_v61 }
  0x98   :  { %597 = vmatprep.subr.bf16.mxu0 %v412_v27  ;;  %482 = vmatmul.mubr.bf16.vlgmr.msra.gmra.mrb[0].mxu1 %v125_v8  ;;  %v704_v27 = vld [vmem:[#allocation7 + $0xa0] sm:$0xff]  ;;  %v419_v40 = vpack.c.bf16 %v307_v25, %v305_v19  ;;  %v144_v8 = vpack.c.bf16 %v120_v0, %v120_v0  ;;  %v323_v14 = vld [vmem:[#allocation5 + $0x570] sm:$0xff] }
  0x99   :  { %491 = vmatprep.mubr.bf16.mxu1 %v132_v15  ;;  %938 = vmatpush3.bf16.msra.mxu1 %v716_v18  ;;  %v726_v37 = vpack.c.bf16 %v705_v28, %v704_v27  ;;  %v119_v15 = vld [vmem:[#allocation2 + $0x120] sm:$0xff]  ;;  %v427_v18 = vpack.c.bf16 %v323_v14, %v321_v13  ;;  %v329_v27 = vld [vmem:[#allocation5 + $0x5a0] sm:$0xff]  ;;  %v715_v13 = vld [vmem:[#allocation7 + $0xf8] sm:$0xff] }
  0x9a   :  { %939 = vmatprep.subr.bf16.mxu1 %v725_v21  ;;  %v143_v19 = vpack.c.bf16 %v119_v15, %v119_v15  ;;  %v325_v21 = vld [vmem:[#allocation5 + $0x580] sm:$0xff]  ;;  %v327_v22 = vld [vmem:[#allocation5 + $0x590] sm:$0xff] }
  0x9b   :  { %598 = vmatpush1.bf16.msra.mxu0 %v411_v38  ;;  %v688_v38 = vld [vmem:[#allocation7 + $0x20] sm:$0xff]  ;;  %v429_v25 = vpack.c.bf16 %v327_v22, %v325_v21  ;;  %v331_v28 = vld [vmem:[#allocation5 + $0x5b0] sm:$0xff] }
  0x9c   :  { %599 = vmatprep.subr.bf16.mxu0 %v414_v42  ;;  %v706_v42 = vld [vmem:[#allocation7 + $0xb0] sm:$0xff]  ;;  %v718_v50 = vpack.c.bf16 %v689_v39, %v688_v38  ;;  %v431_v31 = vpack.c.bf16 %v331_v28, %v329_v27  ;;  %v337_v39 = vld [vmem:[#allocation5 + $0x5e0] sm:$0xff] }
  0x9d   :  { %940 = vmatpush3.bf16.msra.mxu1 %v717_v36  ;;  %v340_v36 = vld [vmem:[#allocation5 + $0x5f8] sm:$0xff]  ;;  %v123_v59 = vld [vmem:[#allocation2 + $0x140] sm:$0xff] }
  0x9e   :  { %573 = vmatmul.mubr.bf16.gmra.mrb[8].mxu0 %v139_v51  ;;  %941 = vmatprep.subr.bf16.mxu1 %v726_v37  ;;  %v727_v51 = vpack.c.bf16 %v707_v43, %v706_v42  ;;  %v433_v37 = vpack.c.bf16 %v335_v34, %v333_v33  ;;  %v436_v38 = vpack.c.bf16 %v340_v36, %v338_v35  ;;  %v87_v42 = vld [vmem:[#allocation2 + $0x20] sm:$0xff]  ;;  %v93_v43 = vld [vmem:[#allocation2 + $0x50] sm:$0xff]  ;;  %v439_v33 = vlaneseq }
  0x9f   :  { %600 = vmatpush1.bf16.msra.mxu0 %v413_v54  ;;  %582 = vmatprep.mubr.bf16.mxu0 %v146_v57  ;;  %v421_v54 = vpack.c.bf16 %v311_v46, %v309_v45  ;;  %v709_v57 = vld [vmem:[#allocation7 + $0xc8] sm:$0xff]  ;;  %v129_v46 = vpack.c.bf16 %v93_v43, %v87_v42  ;;  %v147_v60 = vpack.c.bf16 %v123_v59, %v123_v59  ;;  %v710_v0 = vld [vmem:[#allocation7 + $0xd0] sm:$0xff] }
  0xa0   :  { %601 = vmatprep.subr.bf16.mxu0 %v416_v58  ;;  %492 = vmatmul.mubr.bf16.gmra.mrb[4].mxu1 %v131_v41  ;;  %v424_v58 = vpack.c.bf16 %v316_v49, %v314_v48  ;;  %v728_v2 = vpack.c.bf16 %v709_v57, %v708_v56  ;;  %v106_v45 = vld [vmem:[#allocation2 + $0xb8] sm:$0xff]  ;;  %v99_v48 = vld [vmem:[#allocation2 + $0x80] sm:$0xff]  ;;  %v105_v49 = vld [vmem:[#allocation2 + $0xb0] sm:$0xff] }
  0xa1   :  { %501 = vmatprep.mubr.bf16.mxu1 %v138_v47  ;;  %942 = vmatpush3.bf16.msra.mxu1 %v718_v50  ;;  %v112_v50 = vld [vmem:[#allocation2 + $0xe8] sm:$0xff]  ;;  %v135_v52 = vpack.c.bf16 %v105_v49, %v99_v48  ;;  %v698_v15 = vld [vmem:[#allocation7 + $0x70] sm:$0xff] }
  0xa2   :  { %943 = vmatprep.subr.bf16.mxu1 %v727_v51  ;;  %v118_v51 = vld [vmem:[#allocation2 + $0x118] sm:$0xff]  ;;  %v124_v56 = vld [vmem:[#allocation2 + $0x148] sm:$0xff]  ;;  %v816_v62 = vld [vmem:[#allocation8 + $0x10] sm:$0xff] }
  0xa3   :  { %602 = vmatpush1.bf16.msra.mxu0 %v415_v6  ;;  %v317_v6 = vld [vmem:[#allocation5 + $0x540] sm:$0xff]  ;;  %v142_v53 = vpack.c.bf16 %v118_v51, %v112_v50 }
  0xa4   :  { %603 = vmatprep.subr.bf16.mxu0 %v418_v11  ;;  %v425_v11 = vpack.c.bf16 %v319_v7, %v317_v6  ;;  %v712_v6 = vld [vmem:[#allocation7 + $0xe0] sm:$0xff]  ;;  %v713_v7 = vld [vmem:[#allocation7 + $0xe8] sm:$0xff] }
  0xa5   :  { %944 = vmatpush3.bf16.msra.mxu1 %v719_v1  ;;  %v711_v1 = vld [vmem:[#allocation7 + $0xd8] sm:$0xff] }
  0xa6   :  { %583 = vmatmul.mubr.bf16.gmra.mrb[12].mxu0 %v145_v20  ;;  %945 = vmatprep.subr.bf16.mxu1 %v728_v2  ;;  %v430_v20 = vpack.c.bf16 %v328_v17, %v326_v16  ;;  %v694_v2 = vld [vmem:[#allocation7 + $0x50] sm:$0xff]  ;;  %v699_v16 = vld [vmem:[#allocation7 + $0x78] sm:$0xff] }
  0xa7   :  { %604 = vmatpush1.bf16.msra.mxu0 %v417_v24  ;;  %623 = vmatprep.mubr.bf16.mxu0 %v130_v26  ;;  %v332_v24 = vld [vmem:[#allocation5 + $0x5b8] sm:$0xff]  ;;  %v723_v17 = vpack.c.bf16 %v699_v16, %v698_v15 }
  0xa8   :  { %605 = vmatprep.subr.bf16.mxu0 %v420_v29  ;;  %502 = vmatmul.mubr.bf16.gmra.mrb[8].mxu1 %v137_v4  ;;  %v432_v26 = vpack.c.bf16 %v332_v24, %v330_v23  ;;  %v334_v29 = vld [vmem:[#allocation5 + $0x5c8] sm:$0xff]  ;;  %v695_v4 = vld [vmem:[#allocation7 + $0x58] sm:$0xff] }
  0xa9   :  { %511 = vmatprep.mubr.bf16.mxu1 %v144_v8  ;;  %v434_v32 = vpack.c.bf16 %v336_v30, %v334_v29  ;;  %946 = vmatpush3.bf16.msra.mxu1 %v720_v63  ;;  %v730_v8 = vpack.c.bf16 %v713_v7, %v712_v6  ;;  %v817_v63 = vld [vmem:[#allocation8 + $0x18] sm:$0xff] }
  0xaa   :  { %v831_v6 = vpack.c.bf16 %v817_v63, %v816_v62  ;;  %v827_v62 = vld [vmem:[#allocation8 + $0x68] sm:$0xff] }
  0xab   :  { %606 = vmatpush1.bf16.msra.mxu0 %v419_v40  ;;  %v339_v40 = vld [vmem:[#allocation5 + $0x5f0] sm:$0xff] }
  0xac   :  { %607 = vmatprep.subr.bf16.mxu0 %v422_v44  ;;  %v435_v41 = vpack.c.bf16 %v339_v40, %v337_v39  ;;  %v100_v44 = vld [vmem:[#allocation2 + $0x88] sm:$0xff]  ;;  %v437_v40 = vld [vmem:[%s1347_s2] sm:$0x3] }
  0xad   :  { %v136_v47 = vpack.c.bf16 %v106_v45, %v100_v44 }
  0xaf   :  { %608 = vmatpush1.bf16.msra.mxu0 %v421_v54  ;;  %v111_v54 = vld [vmem:[#allocation2 + $0xe0] sm:$0xff] }
  0xb0   :  { %609 = vmatprep.subr.bf16.mxu0 %v424_v58  ;;  %512 = vmatmul.mubr.bf16.gmra.mrb[12].mxu1 %v143_v19  ;;  %v141_v57 = vpack.c.bf16 %v117_v55, %v111_v54  ;;  %v148_v58 = vpack.c.bf16 %v124_v56, %v124_v56  ;;  %v815_v19 = vld [vmem:[#allocation8 + $0x8] sm:$0xff] }
  0xb3   :  { %610 = vmatpush1.bf16.msra.mxu0 %v423_v3  ;;  %v729_v3 = vpack.c.bf16 %v711_v1, %v710_v0 }
  0xb4   :  { %611 = vmatprep.subr.bf16.mxu0 %v426_v5  ;;  %v721_v5 = vpack.c.bf16 %v695_v4, %v694_v2 }
  0xb5   :  { %947 = vmatprep.subr.bf16.mxu1 %v729_v3 }
  0xb6   :  { %948 = vmatpush3.bf16.msra.mxu1 %v721_v5 }
  0xb7   :  { %612 = vmatpush1.bf16.msra.mxu0 %v425_v11  ;;  %v722_v11 = vpack.c.bf16 %v697_v10, %v696_v9  ;;  %949 = vmatprep.subr.bf16.mxu1 %v730_v8  ;;  %v818_v10 = vld [vmem:[#allocation8 + $0x20] sm:$0xff] }
  0xb8   :  { %613 = vmatprep.subr.bf16.mxu0 %v428_v12  ;;  %v714_v12 = vld [vmem:[#allocation7 + $0xf0] sm:$0xff] }
  0xb9   :  { %v731_v14 = vpack.c.bf16 %v715_v13, %v714_v12 }
  0xba   :  { %950 = vmatpush3.bf16.msra.mxu1 %v722_v11  ;;  %v819_v11 = vld [vmem:[#allocation8 + $0x28] sm:$0xff] }
  0xbb   :  { %614 = vmatpush1.bf16.msra.mxu0 %v427_v18  ;;  %951 = vmatprep.subr.bf16.mxu1 %v731_v14  ;;  %v814_v18 = vld [vmem:[#allocation8] sm:$0xff] }
  0xbc   :  { %615 = vmatprep.subr.bf16.mxu0 %v430_v20  ;;  %v830_v20 = vpack.c.bf16 %v815_v19, %v814_v18  ;;  %v832_v18 = vpack.c.bf16 %v819_v11, %v818_v10 }
  0xbe   :  { %952 = vmatpush3.bf16.msra.mxu1 %v723_v17 }
  0xbf   :  { %616 = vmatpush1.bf16.msra.mxu0 %v429_v25  ;;  %989 = vmatprep.subr.bf16.mxu1 %v830_v20 }
  0xc0   :  { %617 = vmatprep.subr.bf16.mxu0 %v432_v26 }
  0xc3   :  { %618 = vmatpush1.bf16.msra.mxu0 %v431_v31 }
  0xc4   :  { %619 = vmatprep.subr.bf16.mxu0 %v434_v32 }
  0xc7   :  { %620 = vmatpush1.bf16.msra.mxu0 %v433_v37 }
  0xc8   :  { %621 = vmatprep.subr.bf16.mxu0 %v436_v38  ;;  %v440_v38 = vshrl.u32 %v439_v33, 7 }
  0xca   :  { %v441_v39 = vsub.s32 0, %v440_v38 }
  0xcb   :  { %622 = vmatpush1.bf16.msra.mxu0 %v435_v41  ;;  %v445_v41 = vsub.s32 1, %v440_v38 }
  0xcc   :  { %v1302_v42 = vrot.slane %v437_v40, %v441_v39 }
  0xcd   :  { %v1304_v43 = vrot.slane %v437_v40, %v445_v41 }
  0xce   :  { %624 = vmatmul.mubr.bf16.vlgmr.msra.gmra.mrb[0].mxu0 %v129_v46 }
  0xcf   :  { %633 = vmatprep.mubr.bf16.mxu0 %v136_v47 }
  0xd6   :  { %634 = vmatmul.mubr.bf16.gmra.mrb[4].mxu0 %v135_v52 }
  0xd7   :  { %643 = vmatprep.mubr.bf16.mxu0 %v142_v53 }
  0xde   :  { %644 = vmatmul.mubr.bf16.gmra.mrb[8].mxu0 %v141_v57 }
  0xdf   :  { %653 = vmatprep.mubr.bf16.mxu0 %v148_v58 }
  0xe6   :  { %654 = vmatmul.mubr.bf16.gmra.mrb[12].mxu0 %v147_v60 }
 0x16b   :  { %v483_v21 = vpop.f32.mrb[0].mxu1 }
 0x16c   :  { %v485_v22 = vpop.f32.mrb[1].mxu1  ;;  %v484_v44 = vadd.f32 %v483_v21, %v1302_v42 }
 0x16d   :  { %v487_v23 = vpop.f32.mrb[2].mxu1  ;;  %v486_v45 = vadd.f32 %v485_v22, %v1304_v43 }
 0x16e   :  { %v489_v24 = vpop.f32.mrb[3].mxu1  ;;  %v488_v47 = vadd.f32 %v487_v23, %v1302_v42 }
 0x16f   :  { %v490_v50 = vadd.f32 %v489_v24, %v1304_v43 }
 0x173   :  { %v493_v25 = vpop.f32.mrb[4].mxu1 }
 0x174   :  { %v495_v26 = vpop.f32.mrb[5].mxu1  ;;  %v494_v58 = vadd.f32 %v493_v25, %v1302_v42 }
 0x175   :  { %v497_v27 = vpop.f32.mrb[6].mxu1  ;;  %v496_v61 = vadd.f32 %v495_v26, %v1304_v43 }
 0x176   :  { %v499_v28 = vpop.f32.mrb[7].mxu1  ;;  %v498_v3 = vadd.f32 %v497_v27, %v1302_v42 }
 0x177   :  { %v500_v7 = vadd.f32 %v499_v28, %v1304_v43 }
 0x17b   :  { %v503_v29 = vpop.f32.mrb[8].mxu1 }
 0x17c   :  { %v505_v30 = vpop.f32.mrb[9].mxu1  ;;  %v504_v17 = vadd.f32 %v503_v29, %v1302_v42 }
 0x17d   :  { %v1291_v31 = vpop.f32.mrb[10].mxu1  ;;  %v506_v22 = vadd.f32 %v505_v30, %v1304_v43 }
 0x17e   :  { %v1293_v32 = vpop.f32.mrb[11].mxu1  ;;  %v508_v26 = vadd.f32 %v1291_v31, %v1302_v42 }
 0x183   :  { %v1295_v34 = vpop.f32.mrb[12].mxu1 }
 0x184   :  { %v1297_v35 = vpop.f32.mrb[13].mxu1  ;;  %v514_v40 = vadd.f32 %v1295_v34, %v1302_v42  ;;  %v820_v42 = vld [vmem:[#allocation8 + $0x30] sm:$0xff] }
 0x185   :  { %v517_v36 = vpop.f32.mrb[14].mxu1 }
 0x186   :  { %v518_v37 = vpop.f32.mrb[15].mxu1 }
 0x1a1   :  { %v625_v46 = vpop.f32.mrb[0].mxu0 }
 0x1a2   :  { %v1014_v48 = vadd.f32 %v625_v46, %v484_v44  ;;  %v627_v49 = vpop.f32.mrb[1].mxu0  ;;  %v516_v44 = vadd.f32 %v1297_v35, %v1304_v43  ;;  %v822_v35 = vld [vmem:[#allocation8 + $0x40] sm:$0xff] }
 0x1a3   :  { %v1016_v51 = vadd.f32 %v627_v49, %v486_v45  ;;  %v629_v52 = vpop.f32.mrb[2].mxu0 }
 0x1a4   :  { %v1018_v53 = vadd.f32 %v629_v52, %v488_v47  ;;  %v631_v54 = vpop.f32.mrb[3].mxu0  ;;  %v662_v56 = vmax.f32 %v1014_v48, 0.0 }
 0x1a5   :  { %v1020_v55 = vadd.f32 %v631_v54, %v490_v50  ;;  %v663_v59 = vmax.f32 %v1016_v51, 0.0 }
 0x1a6   :  { %v664_v57 = vmax.f32 %v1018_v53, 0.0 }
 0x1a7   :  { %v665_v60 = vmax.f32 %v1020_v55, 0.0  ;;  %v821_v55 = vld [vmem:[#allocation8 + $0x38] sm:$0xff] }
 0x1a8   :  { %v676_v0 = vpack.c.bf16 %v664_v57, %v662_v56  ;;  %v833_v56 = vpack.c.bf16 %v821_v55, %v820_v42 }
 0x1a9   :  { %v677_v1 = vpack.c.bf16 %v665_v60, %v663_v59  ;;  %v635_v2 = vpop.f32.mrb[4].mxu0  ;;  %v825_v59 = vld [vmem:[#allocation8 + $0x58] sm:$0xff] }
 0x1aa   :  { %v1022_v4 = vadd.f32 %v635_v2, %v494_v58  ;;  %v637_v5 = vpop.f32.mrb[5].mxu0  ;;  %v824_v58 = vld [vmem:[#allocation8 + $0x50] sm:$0xff] }
 0x1ab   :  { %v1024_v8 = vadd.f32 %v637_v5, %v496_v61  ;;  %v639_v9 = vpop.f32.mrb[6].mxu0  ;;  %771 = vmatprep.mubr.bf16.mxu1 %v677_v1  ;;  %v835_v60 = vpack.c.bf16 %v825_v59, %v824_v58  ;;  %v826_v61 = vld [vmem:[#allocation8 + $0x60] sm:$0xff]  ;;  %v829_v1 = vld [vmem:[#allocation8 + $0x78] sm:$0xff] }
 0x1ac   :  { %v1026_v12 = vadd.f32 %v639_v9, %v498_v3  ;;  %v641_v13 = vpop.f32.mrb[7].mxu0  ;;  %772 = vmatmul.mubr.bf16.vlgmr.msra.gmra.mrb[16].mxu1 %v676_v0  ;;  %v666_v15 = vmax.f32 %v1022_v4, 0.0  ;;  %v836_v63 = vpack.c.bf16 %v827_v62, %v826_v61  ;;  %v828_v0 = vld [vmem:[#allocation8 + $0x70] sm:$0xff] }
 0x1ad   :  { %v1028_v14 = vadd.f32 %v641_v13, %v500_v7  ;;  %990 = vmatpush3.bf16.msra.mxu1 %v830_v20  ;;  %v667_v19 = vmax.f32 %v1024_v8, 0.0  ;;  %v510_v20 = vadd.f32 %v1293_v32, %v1304_v43  ;;  %v823_v43 = vld [vmem:[#allocation8 + $0x48] sm:$0xff]  ;;  %v837_v2 = vpack.c.bf16 %v829_v1, %v828_v0  ;;  %v935_v4 = vld [vmem:[%s1349_s4] ss:$0 sm:$0xff] }
 0x1ae   :  { %v668_v16 = vmax.f32 %v1026_v12, 0.0  ;;  %991 = vmatprep.subr.bf16.mxu1 %v831_v6  ;;  %v834_v57 = vpack.c.bf16 %v823_v43, %v822_v35 }
 0x1af   :  { %v669_v21 = vmax.f32 %v1028_v14, 0.0 }
 0x1b0   :  { %v678_v23 = vpack.c.bf16 %v668_v16, %v666_v15 }
 0x1b1   :  { %v679_v24 = vpack.c.bf16 %v669_v21, %v667_v19  ;;  %v645_v25 = vpop.f32.mrb[8].mxu0  ;;  %992 = vmatpush3.bf16.msra.mxu1 %v831_v6 }
 0x1b2   :  { %v1030_v27 = vadd.f32 %v645_v25, %v504_v17  ;;  %v647_v28 = vpop.f32.mrb[9].mxu0  ;;  %993 = vmatprep.subr.bf16.mxu1 %v832_v18 }
 0x1b3   :  { %v1032_v29 = vadd.f32 %v647_v28, %v506_v22  ;;  %v649_v33 = vpop.f32.mrb[10].mxu0  ;;  %779 = vmatprep.mubr.bf16.mxu1 %v679_v24 }
 0x1b4   :  { %v1034_v36 = vadd.f32 %v649_v33, %v508_v26  ;;  %v651_v37 = vpop.f32.mrb[11].mxu0  ;;  %780 = vmatmul.mubr.bf16.gmra.mrb[20].mxu1 %v678_v23  ;;  %v670_v38 = vmax.f32 %v1030_v27, 0.0 }
 0x1b5   :  { %v1036_v30 = vadd.f32 %v651_v37, %v510_v20  ;;  %994 = vmatpush3.bf16.msra.mxu1 %v832_v18  ;;  %v671_v31 = vmax.f32 %v1032_v29, 0.0 }
 0x1b6   :  { %v672_v39 = vmax.f32 %v1034_v36, 0.0  ;;  %995 = vmatprep.subr.bf16.mxu1 %v833_v56 }
 0x1b7   :  { %v673_v41 = vmax.f32 %v1036_v30, 0.0 }
 0x1b8   :  { %v680_v45 = vpack.c.bf16 %v672_v39, %v670_v38 }
 0x1b9   :  { %v681_v32 = vpack.c.bf16 %v673_v41, %v671_v31  ;;  %v655_v46 = vpop.f32.mrb[12].mxu0  ;;  %996 = vmatpush3.bf16.msra.mxu1 %v833_v56 }
 0x1ba   :  { %v1038_v47 = vadd.f32 %v655_v46, %v514_v40  ;;  %v657_v48 = vpop.f32.mrb[13].mxu0  ;;  %997 = vmatprep.subr.bf16.mxu1 %v834_v57 }
 0x1bb   :  { %v1040_v49 = vadd.f32 %v657_v48, %v516_v44  ;;  %v659_v50 = vpop.f32.mrb[14].mxu0  ;;  %787 = vmatprep.mubr.bf16.mxu1 %v681_v32 }
 0x1bc   :  { %v660_v51 = vpop.f32.mrb[15].mxu0  ;;  %788 = vmatmul.mubr.bf16.gmra.mrb[24].mxu1 %v680_v45  ;;  %v674_v53 = vmax.f32 %v1038_v47, 0.0 }
 0x1bd   :  { %v675_v52 = vmax.f32 %v1040_v49, 0.0  ;;  %998 = vmatpush3.bf16.msra.mxu1 %v834_v57  ;;  %v936_v49 = vld [vmem:[%s1351_s6] ss:$0 sm:$0xff]  ;;  %s1156_s6 = scalar_lea.vmem %s922_s9, 896 }
 0x1be   :  { %v682_v34 = vpack.c.bf16 %v674_v53, %v674_v53  ;;  %999 = vmatprep.subr.bf16.mxu1 %v835_v60  ;;  %p1157_p4 = scmp.ne.s32.totalorder %s922_s9, %s1156_s6  ;;  %p1162_p6 = scmp.lt.s32.totalorder %s1156_s6, %s1156_s6 }
 0x1bf   :  { %v683_v54 = vpack.c.bf16 %v675_v52, %v675_v52 }
 0x1c0   :  { %p1163_p7 = por %p1162_p6, %p1161_p5 }
 0x1c1   :  { %795 = vmatprep.mubr.bf16.mxu1 %v683_v54  ;;  %1000 = vmatpush3.bf16.msra.mxu1 %v835_v60 }
 0x1c2   :  { %1001 = vmatprep.subr.bf16.mxu1 %v836_v63  ;;  %p1164_p8 = pnand %p1163_p7, %p1157_p4 }
 0x1c4   :  { %796 = vmatmul.mubr.bf16.gmra.mrb[28].mxu1 %v682_v34 }
 0x1c5   :  { %1002 = vmatpush3.bf16.msra.mxu1 %v836_v63 }
 0x1c6   :  { %1003 = vmatprep.subr.bf16.mxu1 %v837_v2 }
 0x1c9   :  { %1004 = vmatpush3.bf16.msra.mxu1 %v837_v2 }
 0x27f   :  { %v953_v3 = vpop.f32.mrb[16].mxu1 }
 0x280   :  { %v954_v5 = vpop.f32.mrb[17].mxu1 }
 0x281   :  { %v955_v6 = vadd.f32 %v954_v5, %v953_v3  ;;  %v956_v7 = vpop.f32.mrb[18].mxu1 }
 0x282   :  { %v957_v8 = vpop.f32.mrb[19].mxu1 }
 0x283   :  { %v774_v9 = vadd.f32 %v955_v6, %v935_v4  ;;  %v958_v10 = vadd.f32 %v957_v8, %v956_v7 }
 0x285   :  { %v777_v11 = vadd.f32 %v958_v10, %v935_v4  ;;  %v803_v12 = vmax.f32 %v774_v9, 0.0 }
 0x287   :  { %v804_v13 = vmax.f32 %v777_v11, 0.0  ;;  %v959_v14 = vpop.f32.mrb[20].mxu1 }
 0x288   :  { %v960_v15 = vpop.f32.mrb[21].mxu1 }
 0x289   :  { %v961_v16 = vadd.f32 %v960_v15, %v959_v14  ;;  %v962_v17 = vpop.f32.mrb[22].mxu1  ;;  %v810_v18 = vpack.c.bf16 %v804_v13, %v803_v12 }
 0x28a   :  { %v963_v19 = vpop.f32.mrb[23].mxu1 }
 0x28b   :  { %v782_v21 = vadd.f32 %v961_v16, %v935_v4  ;;  %v964_v22 = vadd.f32 %v963_v19, %v962_v17  ;;  %1005 = vmatprep.mubr.bf16.mxu1 %v810_v18 }
 0x28d   :  { %v785_v23 = vadd.f32 %v964_v22, %v935_v4  ;;  %v805_v24 = vmax.f32 %v782_v21, 0.0 }
 0x28f   :  { %v806_v25 = vmax.f32 %v785_v23, 0.0  ;;  %v965_v26 = vpop.f32.mrb[24].mxu1 }
 0x290   :  { %v966_v27 = vpop.f32.mrb[25].mxu1 }
 0x291   :  { %v811_v28 = vpack.c.bf16 %v806_v25, %v805_v24  ;;  %v967_v20 = vadd.f32 %v966_v27, %v965_v26  ;;  %v968_v29 = vpop.f32.mrb[26].mxu1 }
 0x292   :  { %v969_v33 = vpop.f32.mrb[27].mxu1 }
 0x293   :  { %v790_v36 = vadd.f32 %v967_v20, %v935_v4  ;;  %v970_v37 = vadd.f32 %v969_v33, %v968_v29  ;;  %1006 = vmatmul.mubr.bf16.vlgmr.msra.gmra.mrb[32].mxu1 %v811_v28 }
 0x295   :  { %v793_v30 = vadd.f32 %v970_v37, %v935_v4  ;;  %v807_v38 = vmax.f32 %v790_v36, 0.0 }
 0x297   :  { %v808_v39 = vmax.f32 %v793_v30, 0.0  ;;  %v971_v40 = vpop.f32.mrb[28].mxu1 }
 0x298   :  { %v972_v31 = vpop.f32.mrb[29].mxu1 }
 0x299   :  { %v973_v41 = vadd.f32 %v972_v31, %v971_v40  ;;  %v974_v44 = vpop.f32.mrb[30].mxu1  ;;  %v812_v45 = vpack.c.bf16 %v808_v39, %v807_v38 }
 0x29a   :  { %v975_v32 = vpop.f32.mrb[31].mxu1 }
 0x29b   :  { %v798_v46 = vadd.f32 %v973_v41, %v935_v4  ;;  %1009 = vmatprep.mubr.bf16.mxu1 %v812_v45 }
 0x29d   :  { %v809_v47 = vmax.f32 %v798_v46, 0.0 }
 0x29f   :  { %v813_v48 = vpack.c.bf16 %v809_v47, %v809_v47 }
 0x2a1   :  { %1010 = vmatmul.mubr.bf16.gmra.mrb[36].mxu1 %v813_v48 }
 0x366   :  { %v1007_v50 = vpop.f32.mrb[32].mxu1 }
 0x367   :  { %v888_v51 = vadd.f32 %v1007_v50, %v936_v49  ;;  %v879_v52 = vpop.f32.mrb[33].mxu1 }
 0x368   :  { %v880_v53 = vadd.f32 %v936_v49, %v879_v52  ;;  %v1008_v54 = vpop.f32.mrb[34].mxu1 }
 0x369   :  { %911 = vst [vmem:[#allocation10 + $0x10] sm:$0xff] %v888_v51  ;;  %v891_v34 = vadd.f32 %v1008_v54, %v936_v49  ;;  %v882_v42 = vpop.f32.mrb[35].mxu1 }
 0x36a   :  { %909 = vst [vmem:[#allocation10] sm:$0xff] %v880_v53  ;;  %v883_v55 = vadd.f32 %v936_v49, %v882_v42 }
 0x36b   :  { %912 = vst [vmem:[#allocation10 + $0x18] sm:$0xff] %v891_v34 }
 0x36c   :  { %910 = vst [vmem:[#allocation10 + $0x8] sm:$0xff] %v883_v55 }
 0x374   :  { %v1011_v56 = vpop.f32.mrb[36].mxu1 }
 0x375   :  { %v904_v35 = vadd.f32 %v1011_v56, %v936_v49  ;;  %v895_v43 = vpop.f32.mrb[37].mxu1 }
 0x376   :  { %v896_v57 = vadd.f32 %v936_v49, %v895_v43  ;;  %v1012_v58 = vpop.f32.mrb[38].mxu1 }
 0x377   :  { %915 = vst [vmem:[#allocation10 + $0x30] sm:$0xff] %v904_v35  ;;  %v898_v59 = vpop.f32.mrb[39].mxu1 }
 0x378   :  { %913 = vst [vmem:[#allocation10 + $0x20] sm:$0xff] %v896_v57  ;;  %v899_v60 = vadd.f32 %v936_v49, %v898_v59 }
 0x37a   :  { %914 = vst [vmem:[#allocation10 + $0x28] sm:$0xff] %v899_v60 }
 0x37b   :  { %1167 = shalt.err (!%p1164_p8)
}
 0x37c   :  { %s1168_s12 = scalar_lea.hbm %s1352_s7, 896 }
 0x37d   :  { %p1169_p9 = scmp.ne.s32.totalorder %s1352_s7, %s1168_s12  ;;  %p1172_p10 = scmp.lt.u32.totalorder %s1168_s12, %s1352_s7 }
 0x37f   :  { %p1174_p11 = pnand %p1172_p10, %p1169_p9 }
 0x381   :  { %1177 = shalt.err (!%p1174_p11)
}
 0x382   :  { %927 = dma.vmem_to_hbm [thread:$0]  %s922_s9, 896, %s1352_s7, [#allocation4], %s1193_s0, %s1193_s0, %s1194_s15  }
 0x383   :  { %1184 = dma.done.wait [#allocation4], 896  }
 0x384   :  { %1185 = vsyncadd [#allocation4], 4294966400 }
 0x385   :  { %931 = vsyncpa [#allocation3], 1 }
 0x386   :  { %932 = vsyncpa [#allocation6], 1 }
 0x387   :  { %933 = vsyncpa [#allocation9], 1 }
 0x388   :  { %934 = vsyncpa [#allocation4], 1 }

</bundles_post_ra>
